<compile_context>
chip_gen: v7x
topology: tpu7x:2x2x1
jax: 0.10.0
libtpu: 0.0.40
codegen_flags: <defaults>
</compile_context>

<pallas_src>
import jax
import jax.numpy as jnp
from jax.experimental import pallas as pl
from jax.experimental.pallas import tpu as pltpu

HIDDEN = 64
BN_EPS = 1e-5
_MIB = 1 << 20


def _cdiv(a, b):
    return (a + b - 1) // b


def _vmem_capacity_bytes():
    """Physical VMEM per TensorCore; conservative (v7x, 64 MiB) fallback."""
    try:
        return int(pltpu.get_tpu_info().vmem_capacity_bytes)
    except Exception:
        return 64 * _MIB


def _make_kernel(bn, tl, chunk):
    """Kernel specialized on static (images-per-step, tile-lanes, chunk-lanes)."""

    def convmask_kernel(x_ref, w1_ref, c1_ref, w2_ref, b2_ref, o_ref):
        # x_ref : (bn, C, tl)   pixels, channels-first (bf16 or f32)
        # w1_ref: (64, C)       folded conv1 weight (BN scale pre-multiplied)
        # c1_ref: (64, 1)       folded bias/shift (f32)
        # w2_ref: (1, 64)       conv2 weight row (f32)
        # b2_ref: (1, 1)        conv2 bias (f32)
        # o_ref : (bn, 1, tl)   lane-dense f32 output tile
        w1 = w1_ref[...]
        c1 = c1_ref[...]
        w2 = w2_ref[...]
        b2 = b2_ref[...]
        for b in range(bn):            # static unroll over images in this block
            off = 0
            while off < tl:            # static column-chunk loop: keeps the
                size = min(chunk, tl - off)  # (64, chunk) f32 intermediate small
                x = x_ref[b, :, pl.ds(off, size)]                        # (C, size)
                h = jnp.dot(w1, x, preferred_element_type=jnp.float32)   # MXU, f32 acc
                h = jnp.maximum(h + c1, 0.0)                             # bias+BN, ReLU (f32)
                o = jnp.dot(w2, h, preferred_element_type=jnp.float32)   # (1, size)
                o_ref[b, :, pl.ds(off, size)] = (o + b2).astype(o_ref.dtype)
                off += size

    return convmask_kernel


def conv_mask_forward(x_nchw, params, *, tl_target=16384, chunk=2048,
                      use_bf16=True):
    """x_nchw: (N, C_in, H, W) float32. Returns (N, 1, H, W) float32."""
    w1, b1, gamma, beta, run_mean, run_var, w2, b2 = params
    N, C, H, W = x_nchw.shape
    HW = H * W
    HWp = _cdiv(HW, 128) * 128        # pad pixels to a lane multiple (<=127 extra)

    in_dtype = jnp.bfloat16 if use_bf16 else jnp.float32
    xbytes = 2 if use_bf16 else 4

    # Channels-first view; cast MXU operand to bf16 (halves HBM reads), then pad.
    x3 = x_nchw.reshape(N, C, HW).astype(in_dtype)
    if HWp != HW:
        x3 = jnp.pad(x3, ((0, 0), (0, 0), (0, HWp - HW)))

    # --- VMEM budgeting (v5e/v6e: 128 MiB physical, v7x: 64 MiB) ------------
    vmem_cap = _vmem_capacity_bytes()
    vmem_limit = min((vmem_cap * 7) // 8, 112 * _MIB)   # scoped limit w/ headroom
    budget = vmem_limit // 2                            # budget for pipelined tiles
    chunk = min(chunk, tl_target)
    fixed = HIDDEN * chunk * 4 * 3 + 2 * _MIB           # h/o temps + weights + margin
    per_lane = 2 * C * xbytes + 2 * 4                   # dbl-buffered x + f32 out / pixel

    tl_cap = max(128, ((budget - fixed) // per_lane) // 128 * 128)
    tl = min(tl_target, tl_cap, HWp)                    # all multiples of 128
    j_blocks = _cdiv(HWp, tl)

    # Small-HW batching: several images per grid step to amortize per-step
    # overhead; keep >=2 grid steps when N > 1 so v7x's 2 TCs both get work.
    if j_blocks == 1 and N > 1:
        bn = max(1, min(tl_target // HWp,
                        (budget - fixed) // max(per_lane * HWp, 1)))
        bn = max(1, min(bn, _cdiv(N, 2)))
    else:
        bn = 1
    grid = (_cdiv(N, bn), j_blocks)

    # Fold BN (eval mode) + conv1 bias into the weights (done once, tiny).
    bn_scale = gamma / jnp.sqrt(run_var + BN_EPS)                 # (64,)
    bn_shift = beta - run_mean * bn_scale                         # (64,)
    w1_f = (w1.T * bn_scale[:, None]).astype(in_dtype)            # (64, C)  MXU operand
    c1_f = (b1 * bn_scale + bn_shift)[:, None].astype(jnp.float32)  # (64, 1) f32
    w2_t = w2.reshape(HIDDEN, 1).T.astype(jnp.float32)            # (1, 64)  f32
    b2_2d = b2.reshape(1, 1).astype(jnp.float32)                  # (1, 1)   f32

    full = lambda n, j: (0, 0)  # tiny params: same full block every grid step

    out3 = pl.pallas_call(
        _make_kernel(bn, tl, chunk),
        out_shape=jax.ShapeDtypeStruct((N, 1, HWp), jnp.float32),
        grid_spec=pltpu.PrefetchScalarGridSpec(
            num_scalar_prefetch=0,
            grid=grid,
            in_specs=[
                pl.BlockSpec((bn, C, tl), lambda n, j: (n, 0, j)),   # x tile
                pl.BlockSpec((HIDDEN, C), full),                     # folded w1
                pl.BlockSpec((HIDDEN, 1), full),                     # folded bias
                pl.BlockSpec((1, HIDDEN), full),                     # w2 row
                pl.BlockSpec((1, 1), full),                          # b2
            ],
            out_specs=pl.BlockSpec((bn, 1, tl), lambda n, j: (n, 0, j)),
        ),
        compiler_params=pltpu.CompilerParams(
            dimension_semantics=("parallel", "parallel"),
            vmem_limit_bytes=int(vmem_limit)),
    )(x3, w1_f, c1_f, w2_t, b2_2d)

    return out3[:, :, :HW].reshape(N, 1, H, W)   # already NCHW


def init_params(key, in_ch):
    """Deterministic parameter init matching the PyTorch module's shapes."""
    k1, k2, k3, k4 = jax.random.split(key, 4)
    # Conv1: (out=64, in=in_ch, 1, 1) -> stored as (in_ch, 64).
    bound1 = 1.0 / jnp.sqrt(in_ch)
    w1 = jax.random.uniform(k1, (in_ch, HIDDEN), jnp.float32, -bound1, bound1)
    b1 = jax.random.uniform(k2, (HIDDEN,), jnp.float32, -bound1, bound1)
    # BatchNorm2d(64) defaults: gamma=1, beta=0, running_mean=0, running_var=1.
    gamma = jnp.ones((HIDDEN,), jnp.float32)
    beta = jnp.zeros((HIDDEN,), jnp.float32)
    run_mean = jnp.zeros((HIDDEN,), jnp.float32)
    run_var = jnp.ones((HIDDEN,), jnp.float32)
    # Conv2: (out=1, in=64, 1, 1) -> stored as (64, 1).
    bound2 = 1.0 / jnp.sqrt(HIDDEN)
    w2 = jax.random.uniform(k3, (HIDDEN, 1), jnp.float32, -bound2, bound2)
    b2 = jax.random.uniform(k4, (1,), jnp.float32, -bound2, bound2)
    return (w1, b1, gamma, beta, run_mean, run_var, w2, b2)


def reference_forward(x_nchw, params, matmul_dtype=jnp.float32):
    """Pure-JAX reference (unfused). `matmul_dtype` mimics the kernel's bf16
    MXU operands for tight comparison; accumulation stays f32."""
    w1, b1, gamma, beta, run_mean, run_var, w2, b2 = params
    x = jnp.transpose(x_nchw, (0, 2, 3, 1)).astype(matmul_dtype)   # NHWC
    h = jnp.einsum('nhwc,cd->nhwd', x, w1.astype(matmul_dtype),
                   preferred_element_type=jnp.float32) + b1
    h = (h - run_mean) / jnp.sqrt(run_var + BN_EPS) * gamma + beta
    h = jnp.maximum(h, 0.0)
    o = jnp.einsum('nhwd,do->nhwo', h, w2) + b2
    return jnp.transpose(o, (0, 3, 1, 2))                          # NCHW


if __name__ == "__main__":
    key = jax.random.PRNGKey(0)
    kx, kp = jax.random.split(key)

    N, C, H, W = 2, 4, 16, 16
    x = jax.random.normal(kx, (N, C, H, W), jnp.float32)
    params = init_params(kp, C)

    fwd = jax.jit(conv_mask_forward)
    out = jax.block_until_ready(fwd(x, params))
    assert out.shape == (N, 1, H, W), out.shape

    # Tight check vs a reference that uses the same bf16 MXU operands.
    ref_bf16 = reference_forward(x, params, matmul_dtype=jnp.bfloat16)
    assert jnp.allclose(out, ref_bf16, atol=2e-2, rtol=2e-2), \
        "mismatch vs bf16-matched reference"
    # Loose sanity check vs the pure-f32 reference (bf16 rounding tolerance).
    ref_f32 = reference_forward(x, params, matmul_dtype=jnp.float32)
    assert jnp.allclose(out, ref_f32, atol=1e-1, rtol=1e-1), \
        "mismatch vs f32 reference"

    print("KERNEL_OK")
</pallas_src>

<mosaic_0001>
module attributes {stable_mosaic.version = 11 : i64} {
  func.func @convmask_kernel(%arg0: i32, %arg1: i32, %arg2: memref<1x4x256xbf16, #tpu.memory_space<vmem>>, %arg3: memref<64x4xbf16, #tpu.memory_space<vmem>>, %arg4: memref<64x1xf32, #tpu.memory_space<vmem>>, %arg5: memref<1x64xf32, #tpu.memory_space<vmem>>, %arg6: memref<1x1xf32, #tpu.memory_space<vmem>>, %arg7: memref<1x1x256xf32, #tpu.memory_space<vmem>>) attributes {dimension_semantics = [#tpu.dimension_semantics<parallel>, #tpu.dimension_semantics<parallel>], iteration_bounds = array<i64: 2, 1>, scalar_prefetch = 0 : i64, scratch_operands = 0 : i64, tpu.core_type = #tpu.core_type<tc>, window_params = [{transform_indices = @transform_0, window_bounds = array<i64: 1, 4, 256>}, {pipeline_mode = #tpu.pipeline_mode<synchronous>, transform_indices = @transform_1, window_bounds = array<i64: 64, 4>}, {pipeline_mode = #tpu.pipeline_mode<synchronous>, transform_indices = @transform_2, window_bounds = array<i64: 64, 1>}, {pipeline_mode = #tpu.pipeline_mode<synchronous>, transform_indices = @transform_3, window_bounds = array<i64: 1, 64>}, {pipeline_mode = #tpu.pipeline_mode<synchronous>, transform_indices = @transform_4, window_bounds = array<i64: 1, 1>}, {transform_indices = @transform_5, window_bounds = array<i64: 1, 1, 256>}]} {
    %c0 = arith.constant 0 : index
    %c0_0 = arith.constant 0 : index
    %0 = vector.load %arg3[%c0, %c0_0] : memref<64x4xbf16, #tpu.memory_space<vmem>>, vector<64x4xbf16>
    %c0_1 = arith.constant 0 : index
    %c0_2 = arith.constant 0 : index
    %1 = vector.load %arg4[%c0_1, %c0_2] : memref<64x1xf32, #tpu.memory_space<vmem>>, vector<64x1xf32>
    %c0_3 = arith.constant 0 : index
    %c0_4 = arith.constant 0 : index
    %2 = vector.load %arg5[%c0_3, %c0_4] : memref<1x64xf32, #tpu.memory_space<vmem>>, vector<1x64xf32>
    %c0_5 = arith.constant 0 : index
    %c0_6 = arith.constant 0 : index
    %3 = vector.load %arg6[%c0_5, %c0_6] : memref<1x1xf32, #tpu.memory_space<vmem>>, vector<1x1xf32>
    %c0_7 = arith.constant 0 : index
    %c0_8 = arith.constant 0 : index
    %c0_9 = arith.constant 0 : index
    %4 = vector.load %arg2[%c0_7, %c0_8, %c0_9] : memref<1x4x256xbf16, #tpu.memory_space<vmem>>, vector<1x4x256xbf16>
    %5 = vector.shape_cast %4 : vector<1x4x256xbf16> to vector<4x256xbf16>
    %cst = arith.constant dense<0.000000e+00> : vector<64x256xf32>
    %6 = tpu.matmul %0, %5, %cst {dimension_numbers = #tpu.dot_dimension_numbers<[1], [0], [0], [1], [0, 0, 1, 1], [], []>} : vector<64x4xbf16>, vector<4x256xbf16>, vector<64x256xf32> -> vector<64x256xf32>
    %7 = vector.broadcast %1 : vector<64x1xf32> to vector<64x256xf32>
    %8 = arith.addf %6, %7 : vector<64x256xf32>
    %cst_10 = arith.constant 0.000000e+00 : f32
    %9 = vector.broadcast %cst_10 : f32 to vector<64x256xf32>
    %10 = arith.maximumf %8, %9 : vector<64x256xf32>
    %cst_11 = arith.constant dense<0.000000e+00> : vector<1x256xf32>
    %11 = tpu.matmul %2, %10, %cst_11 {dimension_numbers = #tpu.dot_dimension_numbers<[1], [0], [0], [1], [0, 0, 1, 1], [], []>} : vector<1x64xf32>, vector<64x256xf32>, vector<1x256xf32> -> vector<1x256xf32>
    %12 = vector.broadcast %3 : vector<1x1xf32> to vector<1x256xf32>
    %13 = arith.addf %11, %12 : vector<1x256xf32>
    %c0_12 = arith.constant 0 : index
    %c0_13 = arith.constant 0 : index
    %c0_14 = arith.constant 0 : index
    %14 = vector.load %arg7[%c0_12, %c0_13, %c0_14] : memref<1x1x256xf32, #tpu.memory_space<vmem>>, vector<1x1x256xf32>
    %15 = vector.shape_cast %14 : vector<1x1x256xf32> to vector<1x256xf32>
    %16 = vector.shape_cast %13 : vector<1x256xf32> to vector<1x1x256xf32>
    tpu.vector_store %arg7[%c0_12, %c0_13, %c0_14], %16 {strides = array<i32>} : memref<1x1x256xf32, #tpu.memory_space<vmem>>, vector<1x1x256xf32>,
    return
  }
  func.func @transform_0(%arg0: i32, %arg1: i32) -> (i32, i32, i32) {
    %c0_i32 = arith.constant 0 : i32
    %c0_i32_0 = arith.constant 0 : i32
    return %arg0, %c0_i32, %arg1 : i32, i32, i32
  }
  func.func @transform_1(%arg0: i32, %arg1: i32) -> (i32, i32) {
    %c0_i32 = arith.constant 0 : i32
    %c0_i32_0 = arith.constant 0 : i32
    %c0_i32_1 = arith.constant 0 : i32
    return %c0_i32, %c0_i32_0 : i32, i32
  }
  func.func @transform_2(%arg0: i32, %arg1: i32) -> (i32, i32) {
    %c0_i32 = arith.constant 0 : i32
    %c0_i32_0 = arith.constant 0 : i32
    %c0_i32_1 = arith.constant 0 : i32
    return %c0_i32, %c0_i32_0 : i32, i32
  }
  func.func @transform_3(%arg0: i32, %arg1: i32) -> (i32, i32) {
    %c0_i32 = arith.constant 0 : i32
    %c0_i32_0 = arith.constant 0 : i32
    %c0_i32_1 = arith.constant 0 : i32
    return %c0_i32, %c0_i32_0 : i32, i32
  }
  func.func @transform_4(%arg0: i32, %arg1: i32) -> (i32, i32) {
    %c0_i32 = arith.constant 0 : i32
    %c0_i32_0 = arith.constant 0 : i32
    %c0_i32_1 = arith.constant 0 : i32
    return %c0_i32, %c0_i32_0 : i32, i32
  }
  func.func @transform_5(%arg0: i32, %arg1: i32) -> (i32, i32, i32) {
    %c0_i32 = arith.constant 0 : i32
    %c0_i32_0 = arith.constant 0 : i32
    return %arg0, %c0_i32, %arg1 : i32, i32, i32
  }
}

</mosaic_0001>

<bundles_post_ra>
// kernel: conv_mask_forward.1
= control target key start
LH: loop header
LB: loop body
LE: loop exit
PB: predicated region body
PF: predicated region fallthrough
CT: control target
= control target key end

     0   :  { %s783_s20 = smov 0   ;;  %s785_s21 = smov 0   ;;  %s863_s0 = inlined_call_operand.vmem [shape: bf16[2,4,256], index: 0, kind: input, shape index: {}]   ;;  %s864_s1 = inlined_call_operand.vmem [shape: bf16[64,4], index: 1, kind: input, shape index: {}]   ;;  %s865_s2 = inlined_call_operand.vmem [shape: f32[64,1], index: 2, kind: input, shape index: {}]   ;;  %s866_s3 = inlined_call_operand.vmem [shape: f32[1,64], index: 3, kind: input, shape index: {}]   ;;  %s867_s4 = inlined_call_operand.<no memory space> [shape: f32[1,1], index: 4, kind: input, shape index: {}]   ;;  %s868_s5 = inlined_call_operand.vmem [shape: f32[2,1,256], index: 5, kind: output, shape index: {}]  }
   0x1   :  { %v10_v0 = vstv %s867_s4  ;;  %s787_s22 = smov 0  }
   0x2   :  { %11 = vst [vmem:[#allocation2] sm:$0x1] %v10_v0 }
   0x3 LB: > { %s29_s4 = sadd.s32 1, %s741_s21  ;;  %p654_p0 = scmp.ge.s32.totalorder %s745_s22, 1  ;;  %s745_s22 = sphi %s787_s22, %s17_s22   ;;  %s741_s21 = sphi %s785_s21, %s870_s21   ;;  %s737_s20 = sphi %s783_s20, %s869_s20  }
   0x4   : > { %p31_p1 = scmp.ge.s32.totalorder %s29_s4, 2  ;;  %p210_p2 = scmp.lt.s32.totalorder %s745_s22, 3 }
   0x6   : > { %s872_s4 = smov (%p31_p1, %s29_s4), 0  ;;  %p211_p3 = pnand %p654_p0, %p210_p2 }
   0x7   : > { %p246_p4 = scmp.lt.s32.totalorder (!%p211_p3), %s737_s20, 1  ;;  %v747_v1 = vmov (!%p211_p3), 0   ;;  %vm366_vm0 = vcmask (!%p211_p3), 1041408   ;;  %v273_v2 = vld [vmem:[%s865_s2] sm:$0xff] (!%p211_p3)  ;;  %v275_v3 = vld [vmem:[%s865_s2 + $0x10] sm:$0xff] (!%p211_p3)  ;;  %v274_v7 = vld [vmem:[%s865_s2 + $0x8] sm:$0xff] (!%p211_p3) }
   0x8   : > { %214 = sbr.rel (%p211_p3) target bundleno = 488 (0x1e8), region = 40  ;;  %405 = vmatprep.mubr.bf16.mxu0 (!%p211_p3), %v747_v1  ;;  %425 = vmatprep.mubr.bf16.mxu1 (!%p211_p3), %v747_v1  ;;  %v276_v8 = vld [vmem:[%s865_s2 + $0x18] sm:$0xff] (!%p211_p3)  ;;  %v719_v9 = vld [vmem:[%s864_s1] sm:$0xff] (!%p211_p3)   ;;  %v720_v10 = vld [vmem:[%s864_s1 + $0x10] sm:$0xff] (!%p211_p3)   ;;  %vm353_vm1 = vcmask (!%p211_p3), 31744   ;;  %v748_v18 = vmov (!%p211_p3), 0.0  }
   0x9   : > { %717 = vset.pattern.permute.xlu0 (!%p211_p3), %v747_v1  ;;  %718 = vset.pattern.permute.xlu1 (!%p211_p3), %v747_v1  ;;  %v277_v11 = vld [vmem:[%s865_s2 + $0x20] sm:$0xff] (!%p211_p3)  ;;  %v278_v12 = vld [vmem:[%s865_s2 + $0x28] sm:$0xff] (!%p211_p3)  ;;  %v279_v13 = vld [vmem:[%s865_s2 + $0x30] sm:$0xff] (!%p211_p3)  ;;  %vm471_vm2 = vcmask (!%p211_p3), 523264  }
   0xa   : > { %286 = vperm.xlu0 (!%p211_p3), %717, %v273_v2   ;;  %296 = vperm.xlu1 (!%p211_p3), %718, %v275_v3   ;;  %v280_v14 = vld [vmem:[%s865_s2 + $0x38] sm:$0xff] (!%p211_p3)  ;;  %v721_v15 = vld [vmem:[%s864_s1 + $0x8] sm:$0xff] (!%p211_p3)   ;;  %v282_v17 = vld [vmem:[#allocation2] sm:$0x1] (!%p211_p3) }
   0xb   : > { %v722_v16 = vld [vmem:[%s864_s1 + $0x18] sm:$0xff] (!%p211_p3)  }
   0xe   : > { %291 = vperm.xlu0 (!%p211_p3), %717, %v274_v7   ;;  %301 = vperm.xlu1 (!%p211_p3), %718, %v276_v8  }
   0xf   : > { %s874_s20 = smov (!%p246_p4, %s737_s20), 1 }
  0x10   : > { %s671_s23 = sshll.u32 %s874_s20, 2  ;;  %s657_s6 = sshll.u32 %s874_s20, 1 }
  0x11   : > { %s253_s28 = scalar_lea.vmem %s863_s0, %s671_s23  ;;  %s262_s9 = scalar_lea.vmem %s868_s5, %s657_s6 }
  0x12   : > { %v662_v4 = vld.sshfl [vmem:[%s253_s28] sm:$0x33 pattern:$0x76325410]  ;;  %306 = vperm.xlu0 %717, %v277_v11   ;;  %311 = vperm.xlu1 %718, %v278_v12  }
  0x13   : > { %v352_v5 = vcombine.high %v662_v4, %v662_v4  ;;  %v368_v6 = vsel %vm366_vm0, %v662_v4, 0 }
  0x15   : > { %663 = vmatprep.subr.msk.bf16.mxu0 %vm366_vm0, %v352_v5  ;;  %688 = vmatprep.subr.msk.bf16.mxu1 %vm366_vm0, %v352_v5 }
  0x16   : > { %374 = vmatpush1.bf16.msra.mxu0 %v368_v6  ;;  %689 = vmatpush1.bf16.msra.mxu1 %v368_v6 }
  0x17   : > { %316 = vperm.xlu0 %717, %v279_v13   ;;  %321 = vperm.xlu1 %718, %v280_v14  }
  0x19   : > { %664 = vmatmul.mubr.msk.bf16.vlgmr.msra.gmra.mrb[0].mxu0 %vm353_vm1, %v719_v9  ;;  %666 = vmatmul.mubr.msk.bf16.vlgmr.msra.gmra.mrb[0].mxu1 %vm353_vm1, %v720_v10 }
  0x1a   : > { %415 = vmatprep.mubr.bf16.mxu0 %v747_v1  ;;  %435 = vmatprep.mubr.bf16.mxu1 %v747_v1 }
  0x1b   : > { %464 = vperm.xlu0 %717, %v282_v17  }
  0x21   : > { %665 = vmatmul.mubr.msk.bf16.gmra.mrb[4].mxu0 %vm353_vm1, %v721_v15  ;;  %667 = vmatmul.mubr.msk.bf16.gmra.mrb[4].mxu1 %vm353_vm1, %v722_v16 }
  0x22   : > { %539 = vmatprep.mubr.f32.mxu1 %v748_v18 }
  0x89   : > { %v287_v19 = vpop.permute.xlu0 %286  ;;  %v297_v20 = vpop.permute.xlu1 %296 }
  0x8d   : > { %v292_v21 = vpop.permute.xlu0 %291  ;;  %v302_v22 = vpop.permute.xlu1 %301 }
  0x91   : > { %v307_v23 = vpop.permute.xlu0 %306  ;;  %v312_v24 = vpop.permute.xlu1 %311 }
  0x96   : > { %v317_v49 = vpop.permute.xlu0 %316  ;;  %v322_v52 = vpop.permute.xlu1 %321 }
  0xec   : > { %v407_v25 = vpop.f32.mrb[0].mxu0  ;;  %v427_v26 = vpop.f32.mrb[0].mxu1 }
  0xed   : > { %v408_v27 = vadd.f32 %v407_v25, %v287_v19  ;;  %v428_v28 = vadd.f32 %v427_v26, %v307_v23  ;;  %v409_v29 = vpop.f32.mrb[1].mxu0  ;;  %v429_v30 = vpop.f32.mrb[1].mxu1 }
  0xee   : > { %v410_v31 = vadd.f32 %v409_v29, %v287_v19  ;;  %v430_v32 = vadd.f32 %v429_v30, %v307_v23  ;;  %v411_v33 = vpop.f32.mrb[2].mxu0  ;;  %v431_v34 = vpop.f32.mrb[2].mxu1  ;;  %v281_v19 = vld [vmem:[%s866_s3] sm:$0x1] }
  0xef   : > { %v454_v35 = vmax.f32 %v428_v28, 0.0  ;;  %v412_v36 = vadd.f32 %v411_v33, %v292_v21  ;;  %v432_v37 = vadd.f32 %v431_v34, %v312_v24  ;;  %v413_v38 = vpop.f32.mrb[3].mxu0  ;;  %v433_v39 = vpop.f32.mrb[3].mxu1  ;;  %v446_v43 = vmax.f32 %v408_v27, 0.0 }
  0xf0   : > { %v455_v40 = vmax.f32 %v430_v32, 0.0  ;;  %v414_v41 = vadd.f32 %v413_v38, %v292_v21  ;;  %v434_v42 = vadd.f32 %v433_v39, %v312_v24  ;;  %v447_v46 = vmax.f32 %v410_v31, 0.0  ;;  %v465_v25 = vpop.permute.xlu0 %464 }
  0xf1   : > { %v448_v44 = vmax.f32 %v412_v36, 0.0  ;;  %v456_v45 = vmax.f32 %v432_v37, 0.0 }
  0xf2   : > { %v449_v47 = vmax.f32 %v414_v41, 0.0  ;;  %v457_v48 = vmax.f32 %v434_v42, 0.0 }
  0xf3   : > { %v674_v50 = vpack.c.bf16 %v448_v44, %v446_v43  ;;  %v682_v51 = vpack.c.bf16 %v456_v45, %v454_v35 }
  0xf4   : > { %v672_v53 = vpack.c.bf16 %v449_v47, %v447_v46  ;;  %v680_v54 = vpack.c.bf16 %v457_v48, %v455_v40  ;;  %v417_v55 = vpop.f32.mrb[4].mxu0  ;;  %v437_v56 = vpop.f32.mrb[4].mxu1 }
  0xf5   : > { %v418_v57 = vadd.f32 %v417_v55, %v297_v20  ;;  %v438_v58 = vadd.f32 %v437_v56, %v317_v49  ;;  %v419_v59 = vpop.f32.mrb[5].mxu0  ;;  %v439_v60 = vpop.f32.mrb[5].mxu1 }
  0xf6   : > { %v420_v61 = vadd.f32 %v419_v59, %v297_v20  ;;  %v440_v62 = vadd.f32 %v439_v60, %v317_v49  ;;  %v421_v63 = vpop.f32.mrb[6].mxu0  ;;  %v441_v0 = vpop.f32.mrb[6].mxu1  ;;  %673 = vmatprep.subr.bf16.mxu1 %v672_v53  ;;  %v467_v20 = vlaneseq }
  0xf7   : > { %v422_v1 = vadd.f32 %v421_v63, %v302_v22  ;;  %v442_v2 = vadd.f32 %v441_v0, %v322_v52  ;;  %v423_v3 = vpop.f32.mrb[7].mxu0  ;;  %v443_v4 = vpop.f32.mrb[7].mxu1  ;;  %675 = vmatpush1.bf16.msra.mxu1 %v674_v50  ;;  %v450_v7 = vmax.f32 %v418_v57, 0.0  ;;  %v458_v8 = vmax.f32 %v438_v58, 0.0 }
  0xf8   : > { %v424_v5 = vadd.f32 %v423_v3, %v302_v22  ;;  %v444_v6 = vadd.f32 %v443_v4, %v322_v52  ;;  %v451_v11 = vmax.f32 %v420_v61, 0.0  ;;  %v459_v12 = vmax.f32 %v440_v62, 0.0 }
  0xf9   : > { %v452_v9 = vmax.f32 %v422_v1, 0.0  ;;  %v460_v10 = vmax.f32 %v442_v2, 0.0  ;;  %v468_v21 = vshrl.u32 %v467_v20, 7  ;;  %v749_v22 = vmov 1966171168  }
  0xfa   : > { %v453_v13 = vmax.f32 %v424_v5, 0.0  ;;  %v461_v14 = vmax.f32 %v444_v6, 0.0  ;;  %v550_v23 = vunpack.c.l.s4 %v749_v22  ;;  %vm566_vm3 = vcmp.lt.s32.totalorder %v467_v20, 256 }
  0xfb   : > { %v678_v15 = vpack.c.bf16 %v452_v9, %v450_v7  ;;  %v686_v16 = vpack.c.bf16 %v460_v10, %v458_v8  ;;  %v469_v24 = vsub.s32 0, %v468_v21 }
  0xfc   : > { %v676_v17 = vpack.c.bf16 %v453_v13, %v451_v11  ;;  %v684_v18 = vpack.c.bf16 %v461_v14, %v459_v12  ;;  %v551_v26 = vunpack.c.0.s8 %v550_v23 }
  0xfd   : > { %v470_v27 = vrot.slane %v465_v25, %v469_v24 }
  0xfe   : > { %677 = vmatprep.subr.bf16.mxu1 %v676_v17  ;;  %v554_v32 = vsub.s32 %v551_v26, %v468_v21 }
  0xff   : > { %679 = vmatpush1.bf16.msra.mxu1 %v678_v15 }
 0x100   : > { %681 = vmatprep.subr.bf16.mxu1 %v680_v54 }
 0x103   : > { %683 = vmatpush1.bf16.msra.mxu1 %v682_v51 }
 0x104   : > { %685 = vmatprep.subr.bf16.mxu1 %v684_v18 }
 0x107   : > { %687 = vmatpush1.bf16.msra.mxu1 %v686_v16 }
 0x10a   : > { %668 = vmatmul.mubr.msk.f32.vlgmr.msra.gmra.mrb[8].mxu1 %vm471_vm2, %v281_v19 }
 0x1dd   : > { %v541_v28 = vpop.f32.mrb[8].mxu1 }
 0x1de   : > { %v542_v29 = vadd.f32 %v541_v28, %v470_v27  ;;  %v543_v30 = vpop.f32.mrb[9].mxu1 }
 0x1df   : > { %v544_v31 = vadd.f32 %v543_v30, %v470_v27 }
 0x1e1   : > { %v548_v33 = vcombine.low %v542_v29, %v544_v31 }
 0x1e3   : > { %v555_v34 = vrot.slane %v548_v33, %v554_v32 }
 0x1e5   : > { %v562_v35 = vrot.slane %v555_v34, %v554_v32 }
 0x1e7   : > { %568 = vst.msk [vmem:[%s262_s9] sm:$0x3] %vm566_vm3, %v562_v35 }
 0x1e8 PF: > { %s17_s22 = sadd.s32 1, %s745_s22   ;;  %s869_s20 = smov %s741_s21 }
 0x1e9   : > { %p14_p5 = scmp.ge.s32.totalorder %s17_s22, 4   ;;  %s870_s21 = smov %s872_s4 }
 0x1eb   :  { %16 = sbr.rel (!%p14_p5) target bundleno = 3 (0x3), region = 70 }

</bundles_post_ra>
